<compile_context>
chip_gen: v5e
topology: v5e:2x2
jax: 0.10.0
libtpu: 0.0.40
codegen_flags: <defaults>
</compile_context>

<pallas_src>
import jax
import jax.numpy as jnp
from jax.experimental import pallas as pl
from jax.experimental.pallas import tpu as pltpu


def _mlp_kernel(xu_ref, xi_ref, w1u_ref, w1i_ref, b1_ref, w2_ref, b2_ref,
                w3_ref, b3_ref, o_ref):
    # xu_ref / xi_ref: (TB, E) bf16 tiles of the batch.
    # Layer 1: split-weight matmul (concat eliminated), f32 accumulation on MXU.
    h1 = jnp.dot(xu_ref[...], w1u_ref[...], preferred_element_type=jnp.float32)
    h1 = h1 + jnp.dot(xi_ref[...], w1i_ref[...], preferred_element_type=jnp.float32)
    h1 = jnp.maximum(h1 + b1_ref[...], 0.0)          # bias + ReLU in f32; Dropout = identity

    # Layer 2: bf16 operands, f32 accumulation.
    h2 = jnp.dot(h1.astype(jnp.bfloat16), w2_ref[...],
                 preferred_element_type=jnp.float32)  # (TB, E//2)
    h2 = jnp.maximum(h2 + b2_ref[...], 0.0)

    # Layer 3 (E/2 -> 1): N=1 matmul replaced by VPU multiply + lane reduction.
    logits = jnp.sum(h2 * w3_ref[...], axis=-1)       # (TB,)
    # Lane-dense (1, TB) store into the (1, B_pad) output slab.
    o_ref[...] = (logits[None, :] + b3_ref[...]).astype(o_ref.dtype)


def prepare_inference_params(params):
    """One-time preprocessing: bf16 tables, split+cast weights (no per-call copies)."""
    E = params["user_embedding"].shape[1]
    w1 = params["w1"]
    return {
        "user_embedding": params["user_embedding"].astype(jnp.bfloat16),
        "item_embedding": params["item_embedding"].astype(jnp.bfloat16),
        "w1u": w1[:E].astype(jnp.bfloat16),               # (E, E)
        "w1i": w1[E:].astype(jnp.bfloat16),               # (E, E)
        "b1": params["b1"].astype(jnp.float32),           # (1, E)
        "w2": params["w2"].astype(jnp.bfloat16),          # (E, E//2)
        "b2": params["b2"].astype(jnp.float32),           # (1, E//2)
        "w3": params["w3"].reshape(1, -1).astype(jnp.float32),  # (1, E//2)
        "b3": params["b3"].reshape(1, 1).astype(jnp.float32),   # (1, 1)
    }


def mlp_forward(users, items, prep, *, block_b=512):
    """users, items: int32 (B,). prep: prepare_inference_params(...) output.
    Returns float32 (B,) — matches output.squeeze()."""
    u_tbl = prep["user_embedding"]   # (n_users, E) bf16
    i_tbl = prep["item_embedding"]   # (n_items, E) bf16
    E = u_tbl.shape[1]
    B = users.shape[0]

    # --- Tile selection ----------------------------------------------------
    if B <= block_b:
        # Single tile: lane block dim equals the full padded extent -> legal
        # even when it is not a multiple of 128.
        TB = max(8, ((B + 7) // 8) * 8)
        n_tiles = 1
    else:
        # Multi-tile: TB must be a multiple of 128 so the (1, TB) output block
        # is lane-legal against the (1, B_pad) output array. (B > TB here, so
        # n_tiles >= 2 and both v7x TensorCores get work.)
        TB = max(128, (block_b // 128) * 128)
        n_tiles = pl.cdiv(B, TB)
    B_pad = n_tiles * TB

    # --- Pad the cheap int32 id vectors, NOT the gathered embeddings --------
    if B_pad != B:
        users = jnp.pad(users, (0, B_pad - B))   # index 0 is always valid
        items = jnp.pad(items, (0, B_pad - B))

    # Gather directly from bf16 tables (half the HBM read vs f32 tables + cast).
    u_emb = jnp.take(u_tbl, users, axis=0)       # (B_pad, E) bf16
    i_emb = jnp.take(i_tbl, items, axis=0)       # (B_pad, E) bf16

    # Weights/biases: full blocks with a constant block index -> VMEM-resident
    # across the whole grid (no re-DMA per batch tile).
    def full(arr):
        nd = arr.ndim
        return pl.BlockSpec(arr.shape, lambda i, _nd=nd: (0,) * _nd)

    # --- VMEM budget (double-buffered inputs/outputs + resident weights) ----
    weight_bytes = ((2 * E * E + E * (E // 2)) * 2            # bf16 w1u, w1i, w2
                    + (E + (E // 2) + (E // 2) + 1) * 4)      # f32 b1, b2, w3, b3
    est_vmem = (2 * (2 * TB * E * 2)      # two bf16 input tiles, double-buffered
                + 2 * (TB * 4)            # f32 output tile, double-buffered
                + 2 * weight_bytes)       # weight blocks (pipeline buffers)
    vmem_limit = int(min(max(4 * est_vmem, 16 * 1024 * 1024), 48 * 1024 * 1024))

    # --- Advisory cost estimate so XLA overlaps the gather with the kernel --
    flops = 2 * B_pad * (2 * E * E + E * (E // 2)) + 2 * B_pad * (E // 2)
    bytes_accessed = 2 * B_pad * E * 2 + B_pad * 4 + weight_bytes
    cost = pl.CostEstimate(flops=flops, transcendentals=0,
                           bytes_accessed=bytes_accessed)

    out = pl.pallas_call(
        _mlp_kernel,
        out_shape=jax.ShapeDtypeStruct((1, B_pad), jnp.float32),
        grid=(n_tiles,),
        in_specs=[
            pl.BlockSpec((TB, E), lambda i: (i, 0)),    # u_emb tile
            pl.BlockSpec((TB, E), lambda i: (i, 0)),    # i_emb tile
            full(prep["w1u"]), full(prep["w1i"]), full(prep["b1"]),
            full(prep["w2"]), full(prep["b2"]),
            full(prep["w3"]), full(prep["b3"]),
        ],
        out_specs=pl.BlockSpec((1, TB), lambda i: (0, i)),
        compiler_params=pltpu.CompilerParams(
            dimension_semantics=("parallel",),          # shard batch tiles across TCs (v7x)
            vmem_limit_bytes=vmem_limit,
        ),
        cost_estimate=cost,
    )(u_emb, i_emb, prep["w1u"], prep["w1i"], prep["b1"],
      prep["w2"], prep["b2"], prep["w3"], prep["b3"])

    return out[0, :B]


def init_params(key, n_users, n_items, embedding_dim):
    """Deterministic init mirroring the PyTorch module's init_weight()."""
    E = embedding_dim
    dims = (2 * E, E, E // 2, 1)
    k_u, k_i, k1, k2, k3 = jax.random.split(key, 5)

    def xavier_uniform(k, fan_in, fan_out):
        limit = jnp.sqrt(6.0 / (fan_in + fan_out))
        # PyTorch stores Linear weight as (out, in); we store (in, out) for x @ W.
        return jax.random.uniform(k, (fan_in, fan_out), jnp.float32, -limit, limit)

    params = {
        "user_embedding": 0.01 * jax.random.normal(k_u, (n_users, E), jnp.float32),
        "item_embedding": 0.01 * jax.random.normal(k_i, (n_items, E), jnp.float32),
        "w1": xavier_uniform(k1, dims[0], dims[1]),
        "b1": jnp.zeros((1, dims[1]), jnp.float32),
        "w2": xavier_uniform(k2, dims[1], dims[2]),
        "b2": jnp.zeros((1, dims[2]), jnp.float32),
        "w3": xavier_uniform(k3, dims[2], dims[3]),
        "b3": jnp.zeros((1, dims[3]), jnp.float32),
    }
    return params


def _reference_bf16(users, items, params):
    """Same math as the kernel (bf16 operands, f32 accumulation)."""
    E = params["user_embedding"].shape[1]
    xu = jnp.take(params["user_embedding"], users, axis=0).astype(jnp.bfloat16)
    xi = jnp.take(params["item_embedding"], items, axis=0).astype(jnp.bfloat16)
    w1u = params["w1"][:E].astype(jnp.bfloat16)
    w1i = params["w1"][E:].astype(jnp.bfloat16)
    h1 = (jnp.dot(xu, w1u, preferred_element_type=jnp.float32)
          + jnp.dot(xi, w1i, preferred_element_type=jnp.float32))
    h1 = jnp.maximum(h1 + params["b1"], 0.0)
    h2 = jnp.dot(h1.astype(jnp.bfloat16), params["w2"].astype(jnp.bfloat16),
                 preferred_element_type=jnp.float32)
    h2 = jnp.maximum(h2 + params["b2"], 0.0)
    return jnp.sum(h2 * params["w3"].reshape(1, -1), axis=-1) + params["b3"][0, 0]


def _reference_f32(users, items, params):
    """Pure-f32 PyTorch-equivalent math."""
    u_emb = jnp.take(params["user_embedding"], users, axis=0)
    i_emb = jnp.take(params["item_embedding"], items, axis=0)
    x = jnp.concatenate([u_emb, i_emb], axis=1)
    h = jnp.maximum(x @ params["w1"] + params["b1"], 0.0)
    h = jnp.maximum(h @ params["w2"] + params["b2"], 0.0)
    return (h @ params["w3"] + params["b3"]).squeeze(-1)


if __name__ == "__main__":
    n_users, n_items, embedding_dim = 32, 64, 32
    batch = 8

    key = jax.random.PRNGKey(0)
    k_params, k_u, k_i, k_u2, k_i2 = jax.random.split(key, 5)
    params = init_params(k_params, n_users, n_items, embedding_dim)
    prep = prepare_inference_params(params)   # one-time cast/split

    # --- Small-batch path (single full-extent tile) --------------------------
    users = jax.random.randint(k_u, (batch,), 0, n_users, dtype=jnp.int32)
    items = jax.random.randint(k_i, (batch,), 0, n_items, dtype=jnp.int32)

    out = mlp_forward(users, items, prep)
    jax.block_until_ready(out)
    assert out.shape == (batch,)

    ref_bf16 = _reference_bf16(users, items, params)
    assert jnp.allclose(out, ref_bf16, atol=1e-5, rtol=1e-5)
    ref_f32 = _reference_f32(users, items, params)
    assert jnp.allclose(out, ref_f32, atol=1e-2, rtol=5e-2)

    # --- Multi-tile path with id padding (B=200, TB=128, n_tiles=2) ----------
    big_batch = 200
    users2 = jax.random.randint(k_u2, (big_batch,), 0, n_users, dtype=jnp.int32)
    items2 = jax.random.randint(k_i2, (big_batch,), 0, n_items, dtype=jnp.int32)

    out2 = mlp_forward(users2, items2, prep, block_b=128)
    jax.block_until_ready(out2)
    assert out2.shape == (big_batch,)

    ref2_bf16 = _reference_bf16(users2, items2, params)
    assert jnp.allclose(out2, ref2_bf16, atol=1e-5, rtol=1e-5)
    ref2_f32 = _reference_f32(users2, items2, params)
    assert jnp.allclose(out2, ref2_f32, atol=1e-2, rtol=5e-2)

    print("KERNEL_OK")
</pallas_src>

<mosaic_0001>
module attributes {stable_mosaic.version = 11 : i64} {
  func.func @_mlp_kernel(%arg0: i32, %arg1: memref<8x32xbf16, #tpu.memory_space<vmem>>, %arg2: memref<8x32xbf16, #tpu.memory_space<vmem>>, %arg3: memref<32x32xbf16, #tpu.memory_space<vmem>>, %arg4: memref<32x32xbf16, #tpu.memory_space<vmem>>, %arg5: memref<1x32xf32, #tpu.memory_space<vmem>>, %arg6: memref<32x16xbf16, #tpu.memory_space<vmem>>, %arg7: memref<1x16xf32, #tpu.memory_space<vmem>>, %arg8: memref<1x16xf32, #tpu.memory_space<vmem>>, %arg9: memref<1x1xf32, #tpu.memory_space<vmem>>, %arg10: memref<1x8xf32, #tpu.memory_space<vmem>>) attributes {dimension_semantics = [#tpu.dimension_semantics<parallel>], iteration_bounds = array<i64: 1>, scalar_prefetch = 0 : i64, scratch_operands = 0 : i64, tpu.core_type = #tpu.core_type<tc>, window_params = [{transform_indices = @transform_0, window_bounds = array<i64: 8, 32>}, {transform_indices = @transform_1, window_bounds = array<i64: 8, 32>}, {pipeline_mode = #tpu.pipeline_mode<synchronous>, transform_indices = @transform_2, window_bounds = array<i64: 32, 32>}, {pipeline_mode = #tpu.pipeline_mode<synchronous>, transform_indices = @transform_3, window_bounds = array<i64: 32, 32>}, {pipeline_mode = #tpu.pipeline_mode<synchronous>, transform_indices = @transform_4, window_bounds = array<i64: 1, 32>}, {pipeline_mode = #tpu.pipeline_mode<synchronous>, transform_indices = @transform_5, window_bounds = array<i64: 32, 16>}, {pipeline_mode = #tpu.pipeline_mode<synchronous>, transform_indices = @transform_6, window_bounds = array<i64: 1, 16>}, {pipeline_mode = #tpu.pipeline_mode<synchronous>, transform_indices = @transform_7, window_bounds = array<i64: 1, 16>}, {pipeline_mode = #tpu.pipeline_mode<synchronous>, transform_indices = @transform_8, window_bounds = array<i64: 1, 1>}, {transform_indices = @transform_9, window_bounds = array<i64: 1, 8>}]} {
    %c0 = arith.constant 0 : index
    %c0_0 = arith.constant 0 : index
    %0 = vector.load %arg1[%c0, %c0_0] : memref<8x32xbf16, #tpu.memory_space<vmem>>, vector<8x32xbf16>
    %c0_1 = arith.constant 0 : index
    %c0_2 = arith.constant 0 : index
    %1 = vector.load %arg3[%c0_1, %c0_2] : memref<32x32xbf16, #tpu.memory_space<vmem>>, vector<32x32xbf16>
    %cst = arith.constant dense<0.000000e+00> : vector<8x32xf32>
    %2 = tpu.matmul %0, %1, %cst {dimension_numbers = #tpu.dot_dimension_numbers<[1], [0], [0], [1], [0, 0, 1, 1], [], []>} : vector<8x32xbf16>, vector<32x32xbf16>, vector<8x32xf32> -> vector<8x32xf32>
    %c0_3 = arith.constant 0 : index
    %c0_4 = arith.constant 0 : index
    %3 = vector.load %arg2[%c0_3, %c0_4] : memref<8x32xbf16, #tpu.memory_space<vmem>>, vector<8x32xbf16>
    %c0_5 = arith.constant 0 : index
    %c0_6 = arith.constant 0 : index
    %4 = vector.load %arg4[%c0_5, %c0_6] : memref<32x32xbf16, #tpu.memory_space<vmem>>, vector<32x32xbf16>
    %cst_7 = arith.constant dense<0.000000e+00> : vector<8x32xf32>
    %5 = tpu.matmul %3, %4, %cst_7 {dimension_numbers = #tpu.dot_dimension_numbers<[1], [0], [0], [1], [0, 0, 1, 1], [], []>} : vector<8x32xbf16>, vector<32x32xbf16>, vector<8x32xf32> -> vector<8x32xf32>
    %6 = arith.addf %2, %5 : vector<8x32xf32>
    %c0_8 = arith.constant 0 : index
    %c0_9 = arith.constant 0 : index
    %7 = vector.load %arg5[%c0_8, %c0_9] : memref<1x32xf32, #tpu.memory_space<vmem>>, vector<1x32xf32>
    %8 = vector.broadcast %7 : vector<1x32xf32> to vector<8x32xf32>
    %9 = arith.addf %6, %8 : vector<8x32xf32>
    %cst_10 = arith.constant 0.000000e+00 : f32
    %10 = vector.broadcast %cst_10 : f32 to vector<8x32xf32>
    %11 = arith.maximumf %9, %10 : vector<8x32xf32>
    %12 = arith.truncf %11 : vector<8x32xf32> to vector<8x32xbf16>
    %c0_11 = arith.constant 0 : index
    %c0_12 = arith.constant 0 : index
    %13 = vector.load %arg6[%c0_11, %c0_12] : memref<32x16xbf16, #tpu.memory_space<vmem>>, vector<32x16xbf16>
    %cst_13 = arith.constant dense<0.000000e+00> : vector<8x16xf32>
    %14 = tpu.matmul %12, %13, %cst_13 {dimension_numbers = #tpu.dot_dimension_numbers<[1], [0], [0], [1], [0, 0, 1, 1], [], []>} : vector<8x32xbf16>, vector<32x16xbf16>, vector<8x16xf32> -> vector<8x16xf32>
    %c0_14 = arith.constant 0 : index
    %c0_15 = arith.constant 0 : index
    %15 = vector.load %arg7[%c0_14, %c0_15] : memref<1x16xf32, #tpu.memory_space<vmem>>, vector<1x16xf32>
    %16 = vector.broadcast %15 : vector<1x16xf32> to vector<8x16xf32>
    %17 = arith.addf %14, %16 : vector<8x16xf32>
    %cst_16 = arith.constant 0.000000e+00 : f32
    %18 = vector.broadcast %cst_16 : f32 to vector<8x16xf32>
    %19 = arith.maximumf %17, %18 : vector<8x16xf32>
    %c0_17 = arith.constant 0 : index
    %c0_18 = arith.constant 0 : index
    %20 = vector.load %arg8[%c0_17, %c0_18] : memref<1x16xf32, #tpu.memory_space<vmem>>, vector<1x16xf32>
    %21 = vector.broadcast %20 : vector<1x16xf32> to vector<8x16xf32>
    %22 = arith.mulf %19, %21 : vector<8x16xf32>
    %cst_19 = arith.constant dense<0.000000e+00> : vector<8xf32>
    %23 = vector.multi_reduction <add>, %22, %cst_19 [1] : vector<8x16xf32> to vector<8xf32>
    %24 = vector.shape_cast %23 : vector<8xf32> to vector<1x8xf32>
    %c0_20 = arith.constant 0 : index
    %c0_21 = arith.constant 0 : index
    %25 = vector.load %arg9[%c0_20, %c0_21] : memref<1x1xf32, #tpu.memory_space<vmem>>, vector<1x1xf32>
    %26 = vector.broadcast %25 : vector<1x1xf32> to vector<1x8xf32>
    %27 = arith.addf %24, %26 : vector<1x8xf32>
    %c0_22 = arith.constant 0 : index
    %c0_23 = arith.constant 0 : index
    %28 = vector.load %arg10[%c0_22, %c0_23] : memref<1x8xf32, #tpu.memory_space<vmem>>, vector<1x8xf32>
    tpu.vector_store %arg10[%c0_22, %c0_23], %27 {strides = array<i32>} : memref<1x8xf32, #tpu.memory_space<vmem>>, vector<1x8xf32>,
    return
  }
  func.func @transform_0(%arg0: i32) -> (i32, i32) {
    %c0_i32 = arith.constant 0 : i32
    %c0_i32_0 = arith.constant 0 : i32
    return %arg0, %c0_i32 : i32, i32
  }
  func.func @transform_1(%arg0: i32) -> (i32, i32) {
    %c0_i32 = arith.constant 0 : i32
    %c0_i32_0 = arith.constant 0 : i32
    return %arg0, %c0_i32 : i32, i32
  }
  func.func @transform_2(%arg0: i32) -> (i32, i32) {
    %c0_i32 = arith.constant 0 : i32
    %c0_i32_0 = arith.constant 0 : i32
    %c0_i32_1 = arith.constant 0 : i32
    return %c0_i32, %c0_i32_0 : i32, i32
  }
  func.func @transform_3(%arg0: i32) -> (i32, i32) {
    %c0_i32 = arith.constant 0 : i32
    %c0_i32_0 = arith.constant 0 : i32
    %c0_i32_1 = arith.constant 0 : i32
    return %c0_i32, %c0_i32_0 : i32, i32
  }
  func.func @transform_4(%arg0: i32) -> (i32, i32) {
    %c0_i32 = arith.constant 0 : i32
    %c0_i32_0 = arith.constant 0 : i32
    %c0_i32_1 = arith.constant 0 : i32
    return %c0_i32, %c0_i32_0 : i32, i32
  }
  func.func @transform_5(%arg0: i32) -> (i32, i32) {
    %c0_i32 = arith.constant 0 : i32
    %c0_i32_0 = arith.constant 0 : i32
    %c0_i32_1 = arith.constant 0 : i32
    return %c0_i32, %c0_i32_0 : i32, i32
  }
  func.func @transform_6(%arg0: i32) -> (i32, i32) {
    %c0_i32 = arith.constant 0 : i32
    %c0_i32_0 = arith.constant 0 : i32
    %c0_i32_1 = arith.constant 0 : i32
    return %c0_i32, %c0_i32_0 : i32, i32
  }
  func.func @transform_7(%arg0: i32) -> (i32, i32) {
    %c0_i32 = arith.constant 0 : i32
    %c0_i32_0 = arith.constant 0 : i32
    %c0_i32_1 = arith.constant 0 : i32
    return %c0_i32, %c0_i32_0 : i32, i32
  }
  func.func @transform_8(%arg0: i32) -> (i32, i32) {
    %c0_i32 = arith.constant 0 : i32
    %c0_i32_0 = arith.constant 0 : i32
    %c0_i32_1 = arith.constant 0 : i32
    return %c0_i32, %c0_i32_0 : i32, i32
  }
  func.func @transform_9(%arg0: i32) -> (i32, i32) {
    %c0_i32 = arith.constant 0 : i32
    %c0_i32_0 = arith.constant 0 : i32
    return %c0_i32, %arg0 : i32, i32
  }
}

</mosaic_0001>

<bundles_post_ra>
// kernel: tpu_custom_call.1
= control target key start
LH: loop header
LB: loop body
LE: loop exit
PB: predicated region body
PF: predicated region fallthrough
CT: control target
= control target key end

     0   :  { %s392_s0 = inlined_call_operand.vmem [shape: bf16[8,32], index: 0, kind: input, shape index: {}]   ;;  %s393_s1 = inlined_call_operand.vmem [shape: bf16[8,32], index: 1, kind: input, shape index: {}]   ;;  %s394_s2 = inlined_call_operand.vmem [shape: bf16[32,32], index: 2, kind: input, shape index: {}]   ;;  %s395_s3 = inlined_call_operand.hbm [shape: bf16[32,32], index: 3, kind: input, shape index: {}]   ;;  %s396_s4 = inlined_call_operand.vmem [shape: f32[1,32], index: 4, kind: input, shape index: {}]   ;;  %s397_s5 = inlined_call_operand.vmem [shape: bf16[32,16], index: 5, kind: input, shape index: {}]   ;;  %s398_s6 = inlined_call_operand.vmem [shape: f32[1,16], index: 6, kind: input, shape index: {}]   ;;  %s399_s7 = inlined_call_operand.vmem [shape: f32[1,16], index: 7, kind: input, shape index: {}]   ;;  %s400_s8 = inlined_call_operand.<no memory space> [shape: f32[1,1], index: 8, kind: input, shape index: {}]   ;;  %s401_s9 = inlined_call_operand.hbm [shape: f32[1,8], index: 9, kind: output, shape index: {}]  }
   0x1   :  { %v14_v0 = vstv %s400_s8 }
   0x2   :  { %15 = vst [vmem:[#allocation2] sm:$0x1] %v14_v0 }
   0x3   :  { %16 = vsyncpa [#allocation4], 0 }
   0x4   :  { %17 = vsyncpa [#allocation5], 0  ;;  %s28_s13 = sshll.u32 %s395_s3, 4  ;;  %s298_s14 = smov [#allocation3]   ;;  %s29_s13 = int_to_ptr.hbm [resolvable:$true] %s28_s13 }
   0x5   :  { %s30_s15 = sshll.u32 %s298_s14, 4  ;;  %s299_s16 = smov 64   ;;  %s31_s15 = int_to_ptr.vmem [resolvable:$true] %s30_s15 }
   0x6   :  { %s300_s17 = smov 4  }
   0x7   :  { %36 = dma.hbm_to_vmem [thread:$0]  %s29_s13, 256, %s31_s15, [#allocation4], %s299_s16, %s299_s16, %s300_s17  }
   0x8   :  { %294 = dma.done.wait [#allocation4], 256  }
   0x9   :  { %295 = vsyncadd [#allocation4], 4294967040  ;;  %v234_v1 = vld [vmem:[#allocation3 + $0x8] sm:$0xff]  ;;  %v233_v3 = vld [vmem:[#allocation3] sm:$0xff]  ;;  %vm74_vm0 = vcmask 261120   ;;  %v301_v10 = vmov 0   ;;  %v181_v29 = vlaneseq }
   0xa   :  { %v232_v2 = vld [vmem:[%s394_s2 + $0x8] sm:$0xff]  ;;  %v231_v4 = vld [vmem:[%s394_s2] sm:$0xff]  ;;  %84 = vmatpush.bf16.msra.mxu0 %v234_v1  ;;  %242 = vset.pattern.permute.xlu0 %v301_v10  ;;  %vm168_vm1 = vcmask 130048   ;;  %s194_s11 = sshll.u32 %s401_s9, 4  ;;  %vm185_vm2 = vcmask 57344   ;;  %s195_s11 = int_to_ptr.hbm [resolvable:$true] %s194_s11 }
   0xb   :  { %112 = vmatpush.bf16.msra.mxu1 %v232_v2  ;;  %v57_v5 = vld [vmem:[%s393_s1] sm:$0xf]  ;;  %v236_v7 = vld [vmem:[%s397_s5 + $0x8] sm:$0xff]  ;;  %v182_v31 = vand.u32 127, %v181_v29 }
   0xc   :  { %v52_v6 = vld [vmem:[%s392_s0] sm:$0xf]  ;;  %155 = vmatpush.bf16.msra.mxu2 %v236_v7 }
   0xd   :  { %v235_v8 = vld [vmem:[%s397_s5] sm:$0xff] }
   0xe   :  { %85 = vmatpush.bf16.msra.mxu0 %v233_v3  ;;  %v172_v9 = vld [vmem:[#allocation2] sm:$0x1] }
   0xf   :  { %113 = vmatpush.bf16.msra.mxu1 %v231_v4  ;;  %175 = vperm.xlu0 %242, %v172_v9   ;;  %v243_v11 = vld [vmem:[%s396_s4] ss:$0 sm:$0xff]  ;;  %s302_s4 = smov [#allocation6]  }
  0x10   :  { %156 = vmatpush.bf16.msra.mxu2 %v235_v8  ;;  %v244_v20 = vld [vmem:[%s398_s6] ss:$0 sm:$0xff]  ;;  %s192_s30 = sshll.u32 %s302_s4, 4  ;;  %s193_s30 = int_to_ptr.vmem [resolvable:$true] %s192_s30 }
  0x11   :  { %212 = vmatmul.msk.bf16.vlgmr.msra.gmra.mxu0 %vm74_vm0, %v57_v5  ;;  %v245_v23 = vld [vmem:[%s399_s7] ss:$0 sm:$0xff] }
  0x12   :  { %221 = vmatmul.msk.bf16.vlgmr.msra.gmra.mxu1 %vm74_vm0, %v52_v6 }
  0x81   :  { %v176_v28 = vpop.permute.xlu0 %175 }
  0x82   :  { %v178_v30 = vperm.slane %v176_v28, 0 }
  0x8e   :  { %v87_v12 = vpop.f32.mrf.mxu0 }
  0x8f   :  { %v115_v13 = vpop.f32.mrf.mxu1 }
  0x90   :  { %v116_v14 = vadd.f32 %v115_v13, %v87_v12 }
  0x92   :  { %v123_v15 = vadd.f32 %v243_v11, %v116_v14 }
  0x94   :  { %v124_v16 = vmax.f32 %v123_v15, 0.0 }
  0x96   :  { %v125_v17 = vpack.c.bf16 %v124_v16, %v124_v16  ;;  %v89_v18 = vpop.f32.mrf.mxu0 }
  0x97   :  { %v117_v19 = vpop.f32.mrf.mxu1 }
  0x98   :  { %230 = vmatmul.msk.bf16.vlgmr.msra.gmra.mxu2 %vm74_vm0, %v125_v17 }
 0x11b   :  { %v158_v21 = vpop.f32.mrf.mxu2 }
 0x11c   :  { %v159_v22 = vadd.f32 %v244_v20, %v158_v21 }
 0x11e   :  { %v162_v24 = vmax.f32 %v159_v22, 0.0 }
 0x120   :  { %v167_v25 = vmul.f32 %v245_v23, %v162_v24 }
 0x122   :  { %v169_v26 = vsel %vm168_vm1, %v167_v25, 0.0 }
 0x123   :  { %v160_v27 = vpop.f32.mrf.mxu2  ;;  %170 = vadd.xlane.f32.xlu0 %v169_v26 }
 0x196   :  { %v171_v32 = vpop.xlane.xlu0 %170 }
 0x197   :  { %v179_v33 = vadd.f32 %v178_v30, %v171_v32 }
 0x199   :  { %v183_v34 = vperm.slane %v179_v33, %v182_v31 }
 0x19b   :  { %186 = vst.msk [vmem:[#allocation6] sm:$0x1] %vm185_vm2, %v183_v34 }
 0x19c   :  { %197 = dma.vmem_to_hbm [thread:$0]  %s193_s30, 16, %s195_s11, [#allocation5]  }
 0x19d   :  { %296 = dma.done.wait [#allocation5], 16  }
 0x19e   :  { %297 = vsyncadd [#allocation5], 4294967280 }
 0x19f   :  { %202 = vsyncpa [#allocation4], 1 }
 0x1a0   :  { %203 = vsyncpa [#allocation5], 1 }

</bundles_post_ra>
